<compile_context>
chip_gen: v5e
topology: v5e:2x2
jax: 0.10.0
libtpu: 0.0.40
codegen_flags: <defaults>
</compile_context>

<pallas_src>
import functools
import math

import jax
import jax.numpy as jnp
from jax.experimental import pallas as pl
from jax.experimental.pallas import tpu as pltpu


# ---------------- Kernel: fused multi-layer highway over a row tile ----------------
def _highway_kernel(num_layers, x_ref, w_ref, b_ref, out_ref):
    # x_ref: [tm, D]   w_ref: [L, D, 2D]   b_ref: [L, 1, 2D]   out_ref: [tm, D]
    x = x_ref[...].astype(jnp.float32)
    D = x.shape[-1]

    for i in range(num_layers):               # L is small & static -> fully unrolled
        w = w_ref[i]                          # [D, 2D]  (transform | gate stacked on N)
        b = b_ref[i]                          # [1, 2D]
        y = jnp.dot(x, w, preferred_element_type=jnp.float32) + b
        h = jnp.maximum(y[:, :D], 0.0)        # relu(transform)   (VPU)
        t = jax.nn.sigmoid(y[:, D:])          # sigmoid(gate)     (EUP exp + recip)
        # H*T + x*(1-T)  ==  t*(h - x) + x    (one fewer multiply)
        x = t * (h - x) + x

    out_ref[...] = x.astype(out_ref.dtype)


# ---------------- Wrapper -----------------------------------------------------------
def highway_forward(x, w_cat, b_cat, *, block_rows=None):
    """x: [B, S, D]; w_cat: [L, D, 2D]; b_cat: [L, 1, 2D] -> [B, S, D]."""
    B, S, D = x.shape
    L = w_cat.shape[0]
    M = B * S
    x2 = x.reshape(M, D)                      # lane-dense [M, D] slab (no data movement)

    if block_rows is None:
        # Biggest tile that comfortably fits VMEM with double buffering; for small
        # problems take the whole slab (single grid step, zero pipeline overhead).
        block_rows = M if M <= 1024 else 1024

    # Pad rows so the grid tiles evenly (keeps the (8,128) block constraint happy
    # for arbitrary B*S). Padding rows compute garbage that is sliced off below.
    M_pad = pl.cdiv(M, block_rows) * block_rows
    if M_pad != M:
        x2 = jnp.pad(x2, ((0, M_pad - M), (0, 0)))
    grid = (M_pad // block_rows,)

    flops = 2 * M_pad * D * (2 * D) * L + 4 * M_pad * D * L
    bytes_accessed = (M_pad * D * 2) * x.dtype.itemsize + w_cat.size * 4 + b_cat.size * 4

    kernel = functools.partial(_highway_kernel, L)
    out = pl.pallas_call(
        kernel,
        out_shape=jax.ShapeDtypeStruct((M_pad, D), x.dtype),
        grid=grid,
        in_specs=[
            pl.BlockSpec((block_rows, D), lambda i: (i, 0)),       # activations (row-tiled)
            pl.BlockSpec((L, D, 2 * D), lambda i: (0, 0, 0)),      # weights (grid-invariant)
            pl.BlockSpec((L, 1, 2 * D), lambda i: (0, 0, 0)),      # biases  (grid-invariant)
        ],
        out_specs=pl.BlockSpec((block_rows, D), lambda i: (i, 0)),
        compiler_params=pltpu.CompilerParams(
            dimension_semantics=("parallel",),                     # independent row tiles
        ),
        cost_estimate=pl.CostEstimate(
            flops=flops, transcendentals=M_pad * D * L, bytes_accessed=bytes_accessed
        ),
    )(x2, w_cat, b_cat)

    if M_pad != M:
        out = out[:M]
    return out.reshape(B, S, D)


# ---------------- Parameter init (matches nn.Linear default init) -------------------
def init_params(key, *, num_layers, hidden_dim):
    D = hidden_dim
    bound = 1.0 / math.sqrt(D)
    ks = jax.random.split(key, 4 * num_layers)
    w_list, b_list = [], []
    for l in range(num_layers):
        wt = jax.random.uniform(ks[4 * l + 0], (D, D), jnp.float32, -bound, bound)
        bt = jax.random.uniform(ks[4 * l + 1], (D,), jnp.float32, -bound, bound)
        wg = jax.random.uniform(ks[4 * l + 2], (D, D), jnp.float32, -bound, bound)
        bg = jax.random.uniform(ks[4 * l + 3], (D,), jnp.float32, -bound, bound)
        # store as x @ W (i.e. W^T of the torch layout), transform | gate stacked on N
        w_list.append(jnp.concatenate([wt.T, wg.T], axis=1))       # [D, 2D]
        b_list.append(jnp.concatenate([bt, bg], axis=0)[None, :])  # [1, 2D]
    return jnp.stack(w_list, axis=0), jnp.stack(b_list, axis=0)


# ---------------- Pure-JAX reference (for correctness check) ------------------------
def highway_ref(x, w_cat, b_cat):
    D = x.shape[-1]
    out = x
    for l in range(w_cat.shape[0]):
        y = out @ w_cat[l] + b_cat[l]
        h = jax.nn.relu(y[..., :D])
        t = jax.nn.sigmoid(y[..., D:])
        out = h * t + out * (1.0 - t)
    return out


if __name__ == "__main__":
    # Highway(hidden_dim=128, num_layers=2); x: [batch=2, seq_len=16, hidden_dim=128]
    B, S, D, L = 2, 16, 128, 2

    key = jax.random.PRNGKey(0)
    kx, kp = jax.random.split(key)
    x = jax.random.normal(kx, (B, S, D), dtype=jnp.float32)
    w_cat, b_cat = init_params(kp, num_layers=L, hidden_dim=D)

    out = highway_forward(x, w_cat, b_cat)
    out = jax.block_until_ready(out)

    ref = highway_ref(x, w_cat, b_cat)
    assert out.shape == (B, S, D)
    assert bool(jnp.all(jnp.isfinite(out)))
    assert bool(jnp.allclose(out, ref, atol=1e-5, rtol=1e-5))
    print("KERNEL_OK")
</pallas_src>

<mosaic_0001>
module attributes {stable_mosaic.version = 11 : i64} {
  func.func @_highway_kernel(%arg0: i32, %arg1: memref<32x128xf32, #tpu.memory_space<vmem>>, %arg2: memref<2x128x256xf32, #tpu.memory_space<vmem>>, %arg3: memref<2x1x256xf32, #tpu.memory_space<vmem>>, %arg4: memref<32x128xf32, #tpu.memory_space<vmem>>) attributes {dimension_semantics = [#tpu.dimension_semantics<parallel>], iteration_bounds = array<i64: 1>, scalar_prefetch = 0 : i64, scratch_operands = 0 : i64, tpu.core_type = #tpu.core_type<tc>, window_params = [{transform_indices = @transform_0, window_bounds = array<i64: 32, 128>}, {pipeline_mode = #tpu.pipeline_mode<synchronous>, transform_indices = @transform_1, window_bounds = array<i64: 2, 128, 256>}, {pipeline_mode = #tpu.pipeline_mode<synchronous>, transform_indices = @transform_2, window_bounds = array<i64: 2, 1, 256>}, {transform_indices = @transform_3, window_bounds = array<i64: 32, 128>}]} {
    %c0 = arith.constant 0 : index
    %c0_0 = arith.constant 0 : index
    %0 = vector.load %arg1[%c0, %c0_0] : memref<32x128xf32, #tpu.memory_space<vmem>>, vector<32x128xf32>
    %c0_1 = arith.constant 0 : index
    %c0_2 = arith.constant 0 : index
    %c0_3 = arith.constant 0 : index
    %1 = vector.load %arg2[%c0_1, %c0_2, %c0_3] : memref<2x128x256xf32, #tpu.memory_space<vmem>>, vector<1x128x256xf32>
    %2 = vector.shape_cast %1 : vector<1x128x256xf32> to vector<128x256xf32>
    %c0_4 = arith.constant 0 : index
    %c0_5 = arith.constant 0 : index
    %c0_6 = arith.constant 0 : index
    %3 = vector.load %arg3[%c0_4, %c0_5, %c0_6] : memref<2x1x256xf32, #tpu.memory_space<vmem>>, vector<1x1x256xf32>
    %4 = vector.shape_cast %3 : vector<1x1x256xf32> to vector<1x256xf32>
    %cst = arith.constant dense<0.000000e+00> : vector<32x256xf32>
    %5 = tpu.matmul %0, %2, %cst {dimension_numbers = #tpu.dot_dimension_numbers<[1], [0], [0], [1], [0, 0, 1, 1], [], []>} : vector<32x128xf32>, vector<128x256xf32>, vector<32x256xf32> -> vector<32x256xf32>
    %6 = vector.broadcast %4 : vector<1x256xf32> to vector<32x256xf32>
    %7 = arith.addf %5, %6 : vector<32x256xf32>
    %8 = vector.extract_strided_slice %7 {offsets = [0, 0], sizes = [32, 128], strides = [1, 1]} : vector<32x256xf32> to vector<32x128xf32>
    %cst_7 = arith.constant 0.000000e+00 : f32
    %9 = vector.broadcast %cst_7 : f32 to vector<32x128xf32>
    %10 = arith.maximumf %8, %9 : vector<32x128xf32>
    %11 = vector.extract_strided_slice %7 {offsets = [0, 128], sizes = [32, 128], strides = [1, 1]} : vector<32x256xf32> to vector<32x128xf32>
    %12 = arith.negf %11 : vector<32x128xf32>
    %13 = math.exp %12 : vector<32x128xf32>
    %cst_8 = arith.constant 1.000000e+00 : f32
    %14 = vector.broadcast %cst_8 : f32 to vector<32x128xf32>
    %15 = arith.addf %14, %13 : vector<32x128xf32>
    %16 = arith.divf %14, %15 : vector<32x128xf32>
    %17 = arith.subf %10, %0 : vector<32x128xf32>
    %18 = arith.mulf %16, %17 : vector<32x128xf32>
    %19 = arith.addf %18, %0 : vector<32x128xf32>
    %c1 = arith.constant 1 : index
    %c0_9 = arith.constant 0 : index
    %c0_10 = arith.constant 0 : index
    %20 = vector.load %arg2[%c1, %c0_9, %c0_10] : memref<2x128x256xf32, #tpu.memory_space<vmem>>, vector<1x128x256xf32>
    %21 = vector.shape_cast %20 : vector<1x128x256xf32> to vector<128x256xf32>
    %c1_11 = arith.constant 1 : index
    %c0_12 = arith.constant 0 : index
    %c0_13 = arith.constant 0 : index
    %22 = vector.load %arg3[%c1_11, %c0_12, %c0_13] : memref<2x1x256xf32, #tpu.memory_space<vmem>>, vector<1x1x256xf32>
    %23 = vector.shape_cast %22 : vector<1x1x256xf32> to vector<1x256xf32>
    %cst_14 = arith.constant dense<0.000000e+00> : vector<32x256xf32>
    %24 = tpu.matmul %19, %21, %cst_14 {dimension_numbers = #tpu.dot_dimension_numbers<[1], [0], [0], [1], [0, 0, 1, 1], [], []>} : vector<32x128xf32>, vector<128x256xf32>, vector<32x256xf32> -> vector<32x256xf32>
    %25 = vector.broadcast %23 : vector<1x256xf32> to vector<32x256xf32>
    %26 = arith.addf %24, %25 : vector<32x256xf32>
    %27 = vector.extract_strided_slice %26 {offsets = [0, 0], sizes = [32, 128], strides = [1, 1]} : vector<32x256xf32> to vector<32x128xf32>
    %cst_15 = arith.constant 0.000000e+00 : f32
    %28 = vector.broadcast %cst_15 : f32 to vector<32x128xf32>
    %29 = arith.maximumf %27, %28 : vector<32x128xf32>
    %30 = vector.extract_strided_slice %26 {offsets = [0, 128], sizes = [32, 128], strides = [1, 1]} : vector<32x256xf32> to vector<32x128xf32>
    %31 = arith.negf %30 : vector<32x128xf32>
    %32 = math.exp %31 : vector<32x128xf32>
    %cst_16 = arith.constant 1.000000e+00 : f32
    %33 = vector.broadcast %cst_16 : f32 to vector<32x128xf32>
    %34 = arith.addf %33, %32 : vector<32x128xf32>
    %35 = arith.divf %33, %34 : vector<32x128xf32>
    %36 = arith.subf %29, %19 : vector<32x128xf32>
    %37 = arith.mulf %35, %36 : vector<32x128xf32>
    %38 = arith.addf %37, %19 : vector<32x128xf32>
    %c0_17 = arith.constant 0 : index
    %c0_18 = arith.constant 0 : index
    %39 = vector.load %arg4[%c0_17, %c0_18] : memref<32x128xf32, #tpu.memory_space<vmem>>, vector<32x128xf32>
    tpu.vector_store %arg4[%c0_17, %c0_18], %38 {strides = array<i32>} : memref<32x128xf32, #tpu.memory_space<vmem>>, vector<32x128xf32>,
    return
  }
  func.func @transform_0(%arg0: i32) -> (i32, i32) {
    %c0_i32 = arith.constant 0 : i32
    %c0_i32_0 = arith.constant 0 : i32
    return %arg0, %c0_i32 : i32, i32
  }
  func.func @transform_1(%arg0: i32) -> (i32, i32, i32) {
    %c0_i32 = arith.constant 0 : i32
    %c0_i32_0 = arith.constant 0 : i32
    %c0_i32_1 = arith.constant 0 : i32
    %c0_i32_2 = arith.constant 0 : i32
    return %c0_i32, %c0_i32_0, %c0_i32_1 : i32, i32, i32
  }
  func.func @transform_2(%arg0: i32) -> (i32, i32, i32) {
    %c0_i32 = arith.constant 0 : i32
    %c0_i32_0 = arith.constant 0 : i32
    %c0_i32_1 = arith.constant 0 : i32
    %c0_i32_2 = arith.constant 0 : i32
    return %c0_i32, %c0_i32_0, %c0_i32_1 : i32, i32, i32
  }
  func.func @transform_3(%arg0: i32) -> (i32, i32) {
    %c0_i32 = arith.constant 0 : i32
    %c0_i32_0 = arith.constant 0 : i32
    return %arg0, %c0_i32 : i32, i32
  }
}

</mosaic_0001>

<bundles_post_ra>
// kernel: tpu_custom_call.1
= control target key start
LH: loop header
LB: loop body
LE: loop exit
PB: predicated region body
PF: predicated region fallthrough
CT: control target
= control target key end

     0   :  { %8 = vsyncpa [#allocation3], 0  ;;  %s728_s0 = inlined_call_operand.hbm [shape: f32[32,128], index: 0, kind: input, shape index: {}]   ;;  %s729_s1 = inlined_call_operand.hbm [shape: f32[2,128,256], index: 1, kind: input, shape index: {}]   ;;  %s730_s2 = inlined_call_operand.hbm [shape: f32[2,1,256], index: 2, kind: input, shape index: {}]   ;;  %s731_s3 = inlined_call_operand.hbm [shape: f32[32,128], index: 3, kind: output, shape index: {}]  }
   0x1   :  { %9 = vsyncpa [#allocation6], 0  ;;  %s28_s14 = sshll.u32 %s729_s1, 4  ;;  %s29_s14 = int_to_ptr.hbm [resolvable:$true] %s28_s14 }
   0x2   :  { %10 = vsyncpa [#allocation4], 0  ;;  %s620_s15 = smov [#allocation5]   ;;  %s15_s19 = sshll.u32 %s728_s0, 4  ;;  %s16_s19 = int_to_ptr.hbm [resolvable:$true] %s15_s19 }
   0x3   :  { %s30_s16 = sshll.u32 %s620_s15, 4  ;;  %s621_s20 = smov 256   ;;  %s31_s16 = int_to_ptr.vmem [resolvable:$true] %s30_s16 }
   0x4   :  { %s622_s21 = smov 16   ;;  %s623_s22 = smov [#allocation2]  }
   0x5   :  { %36 = dma.hbm_to_vmem [thread:$0]  %s29_s14, 8192, %s31_s16, [#allocation6], %s621_s20, %s621_s20, %s622_s21  }
   0x6   :  { %s17_s23 = sshll.u32 %s623_s22, 4  ;;  %s624_s24 = smov 128   ;;  %s18_s23 = int_to_ptr.vmem [resolvable:$true] %s17_s23 }
   0x7   :  { %s625_s25 = smov 8   ;;  %s41_s27 = sshll.u32 %s730_s2, 4  ;;  %s42_s27 = int_to_ptr.hbm [resolvable:$true] %s41_s27 }
   0x8   :  { %23 = dma.hbm_to_vmem [thread:$0]  %s16_s19, 512, %s18_s23, [#allocation3], %s624_s24, %s624_s24, %s625_s25  }
   0x9   :  { %s626_s28 = smov [#allocation7]   ;;  %s627_s29 = smov 32  }
   0xa   :  { %s43_s0 = sshll.u32 %s626_s28, 4  ;;  %s628_s30 = smov 2   ;;  %s44_s0 = int_to_ptr.vmem [resolvable:$true] %s43_s0 }
   0xb   :  { %49 = dma.hbm_to_vmem [thread:$0]  %s42_s27, 64, %s44_s0, [#allocation6], %s627_s29, %s627_s29, %s628_s30  }
   0xc   :  { %614 = dma.done.wait [#allocation3], 512  }
   0xd   :  { %615 = vsyncadd [#allocation3], 4294966784 }
   0xe   :  { %616 = dma.done.wait [#allocation6], 8256  }
   0xf   :  { %617 = vsyncadd [#allocation6], 4294959040  ;;  %v97_v0 = vld [vmem:[#allocation5 + $0xf8] sm:$0xff]  ;;  %v95_v1 = vld [vmem:[#allocation5 + $0xe8] sm:$0xff]  ;;  %s629_s2 = smov [#allocation8]   ;;  %s454_s7 = sshll.u32 %s731_s3, 4  ;;  %s455_s7 = int_to_ptr.hbm [resolvable:$true] %s454_s7 }
  0x10   :  { %133 = vmatpush.msra.mxu1 %v97_v0  ;;  %v93_v2 = vld [vmem:[#allocation5 + $0xd8] sm:$0xff]  ;;  %v91_v3 = vld [vmem:[#allocation5 + $0xc8] sm:$0xff]  ;;  %v96_v4 = vld [vmem:[#allocation5 + $0xf0] sm:$0xff]  ;;  %s452_s4 = sshll.u32 %s629_s2, 4  ;;  %s453_s4 = int_to_ptr.vmem [resolvable:$true] %s452_s4 }
  0x11   :  { %v94_v5 = vld [vmem:[#allocation5 + $0xe0] sm:$0xff]  ;;  %104 = vmatpush.msra.mxu0 %v96_v4  ;;  %v89_v6 = vld [vmem:[#allocation5 + $0xb8] sm:$0xff]  ;;  %v92_v7 = vld [vmem:[#allocation5 + $0xd0] sm:$0xff] }
  0x12   :  { %134 = vmatpush.msra.mxu1 %v95_v1  ;;  %v87_v8 = vld [vmem:[#allocation5 + $0xa8] sm:$0xff]  ;;  %v90_v9 = vld [vmem:[#allocation5 + $0xc0] sm:$0xff]  ;;  %v85_v10 = vld [vmem:[#allocation5 + $0x98] sm:$0xff] }
  0x13   :  { %105 = vmatpush.msra.mxu0 %v94_v5  ;;  %v88_v11 = vld [vmem:[#allocation5 + $0xb0] sm:$0xff]  ;;  %v83_v12 = vld [vmem:[#allocation5 + $0x88] sm:$0xff]  ;;  %v86_v13 = vld [vmem:[#allocation5 + $0xa0] sm:$0xff] }
  0x14   :  { %135 = vmatpush.msra.mxu1 %v93_v2  ;;  %v81_v14 = vld [vmem:[#allocation5 + $0x78] sm:$0xff]  ;;  %v84_v15 = vld [vmem:[#allocation5 + $0x90] sm:$0xff]  ;;  %v79_v16 = vld [vmem:[#allocation5 + $0x68] sm:$0xff] }
  0x15   :  { %106 = vmatpush.msra.mxu0 %v92_v7  ;;  %v82_v17 = vld [vmem:[#allocation5 + $0x80] sm:$0xff]  ;;  %v77_v18 = vld [vmem:[#allocation5 + $0x58] sm:$0xff]  ;;  %v80_v19 = vld [vmem:[#allocation5 + $0x70] sm:$0xff] }
  0x16   :  { %136 = vmatpush.msra.mxu1 %v91_v3  ;;  %v75_v20 = vld [vmem:[#allocation5 + $0x48] sm:$0xff]  ;;  %v78_v21 = vld [vmem:[#allocation5 + $0x60] sm:$0xff]  ;;  %v73_v22 = vld [vmem:[#allocation5 + $0x38] sm:$0xff] }
  0x17   :  { %107 = vmatpush.msra.mxu0 %v90_v9  ;;  %v76_v23 = vld [vmem:[#allocation5 + $0x50] sm:$0xff]  ;;  %v71_v24 = vld [vmem:[#allocation5 + $0x28] sm:$0xff]  ;;  %v74_v25 = vld [vmem:[#allocation5 + $0x40] sm:$0xff] }
  0x18   :  { %137 = vmatpush.msra.mxu1 %v89_v6  ;;  %v69_v26 = vld [vmem:[#allocation5 + $0x18] sm:$0xff]  ;;  %v72_v27 = vld [vmem:[#allocation5 + $0x30] sm:$0xff]  ;;  %v67_v28 = vld [vmem:[#allocation5 + $0x8] sm:$0xff] }
  0x19   :  { %108 = vmatpush.msra.mxu0 %v88_v11  ;;  %v70_v29 = vld [vmem:[#allocation5 + $0x20] sm:$0xff]  ;;  %v68_v31 = vld [vmem:[#allocation5 + $0x10] sm:$0xff]  ;;  %v666_v33 = vld [vmem:[#allocation2 + $0x8] sm:$0xff] }
  0x1a   :  { %138 = vmatpush.msra.mxu1 %v87_v8  ;;  %v662_v30 = vld [vmem:[#allocation2] sm:$0xff]  ;;  %v670_v34 = vld [vmem:[#allocation2 + $0x10] sm:$0xff]  ;;  %v674_v35 = vld [vmem:[#allocation2 + $0x18] sm:$0xff] }
  0x1b   :  { %109 = vmatpush.msra.mxu0 %v86_v13  ;;  %v66_v32 = vld [vmem:[#allocation5] sm:$0xff]  ;;  %v285_v36 = vld [vmem:[#allocation5 + $0x1f0] sm:$0xff]  ;;  %v286_v37 = vld [vmem:[#allocation5 + $0x1f8] sm:$0xff] }
  0x1c   :  { %139 = vmatpush.msra.mxu1 %v85_v10  ;;  %294 = vmatpush.msra.mxu2 %v285_v36  ;;  %v283_v38 = vld [vmem:[#allocation5 + $0x1e0] sm:$0xff]  ;;  %v284_v39 = vld [vmem:[#allocation5 + $0x1e8] sm:$0xff]  ;;  %v281_v40 = vld [vmem:[#allocation5 + $0x1d0] sm:$0xff] }
  0x1d   :  { %110 = vmatpush.msra.mxu0 %v84_v15  ;;  %323 = vmatpush.msra.mxu3 %v286_v37  ;;  %v282_v41 = vld [vmem:[#allocation5 + $0x1d8] sm:$0xff]  ;;  %v279_v42 = vld [vmem:[#allocation5 + $0x1c0] sm:$0xff]  ;;  %v280_v43 = vld [vmem:[#allocation5 + $0x1c8] sm:$0xff] }
  0x1e   :  { %140 = vmatpush.msra.mxu1 %v83_v12  ;;  %295 = vmatpush.msra.mxu2 %v283_v38  ;;  %v277_v44 = vld [vmem:[#allocation5 + $0x1b0] sm:$0xff]  ;;  %v278_v45 = vld [vmem:[#allocation5 + $0x1b8] sm:$0xff]  ;;  %v275_v46 = vld [vmem:[#allocation5 + $0x1a0] sm:$0xff] }
  0x1f   :  { %111 = vmatpush.msra.mxu0 %v82_v17  ;;  %324 = vmatpush.msra.mxu3 %v284_v39  ;;  %v276_v47 = vld [vmem:[#allocation5 + $0x1a8] sm:$0xff]  ;;  %v273_v48 = vld [vmem:[#allocation5 + $0x190] sm:$0xff]  ;;  %v274_v49 = vld [vmem:[#allocation5 + $0x198] sm:$0xff] }
  0x20   :  { %141 = vmatpush.msra.mxu1 %v81_v14  ;;  %296 = vmatpush.msra.mxu2 %v281_v40  ;;  %v271_v50 = vld [vmem:[#allocation5 + $0x180] sm:$0xff]  ;;  %v272_v51 = vld [vmem:[#allocation5 + $0x188] sm:$0xff]  ;;  %v269_v52 = vld [vmem:[#allocation5 + $0x170] sm:$0xff] }
  0x21   :  { %112 = vmatpush.msra.mxu0 %v80_v19  ;;  %325 = vmatpush.msra.mxu3 %v282_v41  ;;  %v270_v53 = vld [vmem:[#allocation5 + $0x178] sm:$0xff]  ;;  %v267_v54 = vld [vmem:[#allocation5 + $0x160] sm:$0xff]  ;;  %v268_v55 = vld [vmem:[#allocation5 + $0x168] sm:$0xff] }
  0x22   :  { %142 = vmatpush.msra.mxu1 %v79_v16  ;;  %297 = vmatpush.msra.mxu2 %v279_v42  ;;  %v265_v56 = vld [vmem:[#allocation5 + $0x150] sm:$0xff]  ;;  %v266_v57 = vld [vmem:[#allocation5 + $0x158] sm:$0xff]  ;;  %v263_v58 = vld [vmem:[#allocation5 + $0x140] sm:$0xff] }
  0x23   :  { %113 = vmatpush.msra.mxu0 %v78_v21  ;;  %326 = vmatpush.msra.mxu3 %v280_v43  ;;  %v264_v59 = vld [vmem:[#allocation5 + $0x148] sm:$0xff]  ;;  %v98_v60 = vld [vmem:[#allocation7] sm:$0x3]  ;;  %v261_v61 = vld [vmem:[#allocation5 + $0x130] sm:$0xff] }
  0x24   :  { %143 = vmatpush.msra.mxu1 %v77_v18  ;;  %298 = vmatpush.msra.mxu2 %v277_v44  ;;  %v262_v62 = vld [vmem:[#allocation5 + $0x138] sm:$0xff]  ;;  %v101_v63 = vperm.slane %v98_v60, 1  ;;  %v259_v0 = vld [vmem:[#allocation5 + $0x120] sm:$0xff]  ;;  %v260_v1 = vld [vmem:[#allocation5 + $0x128] sm:$0xff]  ;;  %v678_v15 = vperm.slane %v98_v60, 0 }
  0x25   :  { %114 = vmatpush.msra.mxu0 %v76_v23  ;;  %327 = vmatpush.msra.mxu3 %v278_v45  ;;  %v257_v2 = vld [vmem:[#allocation5 + $0x110] sm:$0xff]  ;;  %v258_v3 = vld [vmem:[#allocation5 + $0x118] sm:$0xff]  ;;  %v255_v6 = vld [vmem:[#allocation5 + $0x100] sm:$0xff] }
  0x26   :  { %144 = vmatpush.msra.mxu1 %v75_v20  ;;  %299 = vmatpush.msra.mxu2 %v275_v46  ;;  %v256_v7 = vld [vmem:[#allocation5 + $0x108] sm:$0xff] }
  0x27   :  { %115 = vmatpush.msra.mxu0 %v74_v25  ;;  %328 = vmatpush.msra.mxu3 %v276_v47 }
  0x28   :  { %145 = vmatpush.msra.mxu1 %v73_v22  ;;  %300 = vmatpush.msra.mxu2 %v273_v48 }
  0x29   :  { %116 = vmatpush.msra.mxu0 %v72_v27  ;;  %329 = vmatpush.msra.mxu3 %v274_v49 }
  0x2a   :  { %146 = vmatpush.msra.mxu1 %v71_v24  ;;  %301 = vmatpush.msra.mxu2 %v271_v50 }
  0x2b   :  { %117 = vmatpush.msra.mxu0 %v70_v29  ;;  %330 = vmatpush.msra.mxu3 %v272_v51 }
  0x2c   :  { %147 = vmatpush.msra.mxu1 %v69_v26  ;;  %302 = vmatpush.msra.mxu2 %v269_v52 }
  0x2d   :  { %118 = vmatpush.msra.mxu0 %v68_v31  ;;  %331 = vmatpush.msra.mxu3 %v270_v53 }
  0x2e   :  { %148 = vmatpush.msra.mxu1 %v67_v28  ;;  %303 = vmatpush.msra.mxu2 %v267_v54 }
  0x2f   :  { %149 = vmatmul.f32.vlgmr.msra.gmra.mxu1 %v662_v30  ;;  %119 = vmatpush.msra.mxu0 %v66_v32 }
  0x30   :  { %120 = vmatmul.f32.vlgmr.msra.gmra.mxu0 %v662_v30  ;;  %332 = vmatpush.msra.mxu3 %v268_v55 }
  0x31   :  { %304 = vmatpush.msra.mxu2 %v265_v56 }
  0x32   :  { %333 = vmatpush.msra.mxu3 %v266_v57 }
  0x33   :  { %305 = vmatpush.msra.mxu2 %v263_v58 }
  0x34   :  { %334 = vmatpush.msra.mxu3 %v264_v59 }
  0x35   :  { %306 = vmatpush.msra.mxu2 %v261_v61 }
  0x36   :  { %335 = vmatpush.msra.mxu3 %v262_v62 }
  0x37   :  { %152 = vmatmul.f32.gmra.mxu1 %v666_v33  ;;  %307 = vmatpush.msra.mxu2 %v259_v0 }
  0x38   :  { %123 = vmatmul.f32.gmra.mxu0 %v666_v33  ;;  %336 = vmatpush.msra.mxu3 %v260_v1 }
  0x39   :  { %308 = vmatpush.msra.mxu2 %v257_v2 }
  0x3a   :  { %337 = vmatpush.msra.mxu3 %v258_v3 }
  0x3b   :  { %309 = vmatpush.msra.mxu2 %v255_v6 }
  0x3c   :  { %338 = vmatpush.msra.mxu3 %v256_v7 }
  0x3f   :  { %155 = vmatmul.f32.gmra.mxu1 %v670_v34 }
  0x40   :  { %126 = vmatmul.f32.gmra.mxu0 %v670_v34 }
  0x47   :  { %158 = vmatmul.f32.gmra.mxu1 %v674_v35 }
  0x48   :  { %129 = vmatmul.f32.gmra.mxu0 %v674_v35 }
  0xac   :  { %v150_v4 = vpop.f32.mrf.mxu1 }
  0xad   :  { %v151_v5 = vadd.f32 %v150_v4, %v101_v63  ;;  %v121_v11 = vpop.f32.mrf.mxu0 }
  0xae   :  { %v122_v18 = vadd.f32 %v121_v11, %v678_v15 }
  0xaf   :  { %v468_v8 = vmul.f32 -1.442695, %v151_v5 }
  0xb0   :  { %v162_v25 = vmax.f32 %v122_v18, 0.0 }
  0xb1   :  { %486 = vpow2.f32 %v468_v8 }
  0xb2   :  { %v242_v36 = vsub.f32 %v162_v25, %v662_v30 }
  0xb4   :  { %v153_v9 = vpop.f32.mrf.mxu1 }
  0xb5   :  { %v154_v10 = vadd.f32 %v153_v9, %v101_v63  ;;  %v124_v23 = vpop.f32.mrf.mxu0 }
  0xb6   :  { %v125_v40 = vadd.f32 %v124_v23, %v678_v15 }
  0xb7   :  { %v487_v12 = vpop.eup %486  ;;  %v469_v13 = vmul.f32 -1.442695, %v154_v10 }
  0xb8   :  { %v178_v14 = vadd.f32 1.0, %v487_v12  ;;  %v163_v50 = vmax.f32 %v125_v40, 0.0 }
  0xb9   :  { %488 = vpow2.f32 %v469_v13 }
  0xba   :  { %490 = vrcp.f32 %v178_v14  ;;  %v193_v27 = vand.u32 2147483648, %v178_v14  ;;  %v191_v31 = vand.u32 2147483647, %v178_v14  ;;  %vm187_vm1 = vweird.f32 %v178_v14 }
  0xbb   :  { %v243_v57 = vsub.f32 %v163_v50, %v666_v33 }
  0xbc   :  { %v156_v16 = vpop.f32.mrf.mxu1  ;;  %v194_v43 = vor.u32 1.1754944e-38, %v193_v27  ;;  %vm192_vm3 = vcmp.eq.f32.partialorder %v191_v31, 8.507059e+37 }
  0xbd   :  { %v157_v17 = vadd.f32 %v156_v16, %v101_v63  ;;  %v127_v47 = vpop.f32.mrf.mxu0 }
  0xbe   :  { %v128_v58 = vadd.f32 %v127_v47, %v678_v15 }
  0xbf   :  { %v489_v19 = vpop.eup %488  ;;  %v470_v20 = vmul.f32 -1.442695, %v157_v17 }
  0xc0   :  { %v491_v21 = vpop.eup %490  ;;  %v179_v22 = vadd.f32 1.0, %v489_v19  ;;  %v164_v2 = vmax.f32 %v128_v58, 0.0 }
  0xc1   :  { %v183_v24 = vmul.f32 %v491_v21, %v178_v14  ;;  %492 = vpow2.f32 %v470_v20  ;;  %vm188_vm0 = vweird.f32 %v491_v21 }
  0xc2   :  { %494 = vrcp.f32 %v179_v22  ;;  %vm189_vm2 = vmor %vm187_vm1, %vm188_vm0  ;;  %v208_v51 = vand.u32 2147483648, %v179_v22  ;;  %v206_v54 = vand.u32 2147483647, %v179_v22  ;;  %vm202_vm5 = vweird.f32 %v179_v22 }
  0xc3   :  { %v184_v26 = vsub.f32 1.0, %v183_v24  ;;  %v244_v9 = vsub.f32 %v164_v2, %v670_v34 }
  0xc4   :  { %v159_v28 = vpop.f32.mrf.mxu1  ;;  %v209_v61 = vor.u32 1.1754944e-38, %v208_v51  ;;  %vm207_vm7 = vcmp.eq.f32.partialorder %v206_v54, 8.507059e+37 }
  0xc5   :  { %v185_v29 = vmul.f32 %v491_v21, %v184_v26  ;;  %v160_v32 = vadd.f32 %v159_v28, %v101_v63  ;;  %v130_v4 = vpop.f32.mrf.mxu0  ;;  %v288_v28 = vld [vmem:[#allocation7 + $0x2] sm:$0x3] }
  0xc6   :  { %v131_v10 = vadd.f32 %v130_v4, %v678_v15 }
  0xc7   :  { %v493_v37 = vpop.eup %492  ;;  %v186_v38 = vadd.f32 %v491_v21, %v185_v29  ;;  %v471_v39 = vmul.f32 -1.442695, %v160_v32  ;;  %v291_v29 = vperm.slane %v288_v28, 1 }
  0xc8   :  { %v495_v41 = vpop.eup %494  ;;  %v180_v42 = vadd.f32 1.0, %v493_v37  ;;  %v165_v18 = vmax.f32 %v131_v10, 0.0 }
  0xc9   :  { %v198_v44 = vmul.f32 %v495_v41, %v179_v22  ;;  %v190_v45 = vsel %vm189_vm2, %v491_v21, %v186_v38  ;;  %496 = vpow2.f32 %v471_v39  ;;  %vm203_vm4 = vweird.f32 %v495_v41 }
  0xca   :  { %498 = vrcp.f32 %v180_v42  ;;  %v195_v46 = vsel %vm192_vm3, %v194_v43, %v190_v45  ;;  %vm204_vm6 = vmor %vm202_vm5, %vm203_vm4  ;;  %v223_v3 = vand.u32 2147483648, %v180_v42  ;;  %v221_v7 = vand.u32 2147483647, %v180_v42 }
  0xcb   :  { %v199_v48 = vsub.f32 1.0, %v198_v44  ;;  %v246_v49 = vmul.f32 %v242_v36, %v195_v46  ;;  %vm217_vm9 = vweird.f32 %v180_v42  ;;  %v245_v15 = vsub.f32 %v165_v18, %v674_v35 }
  0xcc   :  { %v224_v12 = vor.u32 1.1754944e-38, %v223_v3  ;;  %vm222_vm11 = vcmp.eq.f32.partialorder %v221_v7, 8.507059e+37  ;;  %v708_v44 = vperm.slane %v288_v28, 0 }
  0xcd   :  { %v684_v52 = vadd.f32 %v246_v49, %v662_v30  ;;  %v200_v53 = vmul.f32 %v495_v41, %v199_v48 }
  0xcf   :  { %v497_v55 = vpop.eup %496  ;;  %v201_v56 = vadd.f32 %v495_v41, %v200_v53  ;;  %310 = vmatmul.f32.vlgmr.msra.gmra.mxu2 %v684_v52  ;;  %339 = vmatmul.f32.vlgmr.msra.gmra.mxu3 %v684_v52 }
  0xd0   :  { %v499_v59 = vpop.eup %498  ;;  %v181_v60 = vadd.f32 1.0, %v497_v55 }
  0xd1   :  { %v213_v30 = vmul.f32 %v499_v59, %v180_v42  ;;  %v205_v62 = vsel %vm204_vm6, %v495_v41, %v201_v56  ;;  %vm218_vm8 = vweird.f32 %v499_v59 }
  0xd2   :  { %500 = vrcp.f32 %v181_v60  ;;  %v210_v63 = vsel %vm207_vm7, %v209_v61, %v205_v62  ;;  %vm219_vm10 = vmor %vm217_vm9, %vm218_vm8  ;;  %v238_v19 = vand.u32 2147483648, %v181_v60  ;;  %v236_v22 = vand.u32 2147483647, %v181_v60 }
  0xd3   :  { %v214_v0 = vsub.f32 1.0, %v213_v30  ;;  %v247_v1 = vmul.f32 %v243_v57, %v210_v63  ;;  %vm232_vm13 = vweird.f32 %v181_v60 }
  0xd4   :  { %v239_v24 = vor.u32 1.1754944e-38, %v238_v19  ;;  %vm237_vm15 = vcmp.eq.f32.partialorder %v236_v22, 8.507059e+37 }
  0xd5   :  { %v691_v5 = vadd.f32 %v247_v1, %v666_v33  ;;  %v215_v6 = vmul.f32 %v499_v59, %v214_v0 }
  0xd7   :  { %v216_v8 = vadd.f32 %v499_v59, %v215_v6  ;;  %313 = vmatmul.f32.gmra.mxu2 %v691_v5  ;;  %342 = vmatmul.f32.gmra.mxu3 %v691_v5 }
  0xd8   :  { %v501_v11 = vpop.eup %500 }
  0xd9   :  { %v228_v13 = vmul.f32 %v501_v11, %v181_v60  ;;  %v220_v14 = vsel %vm219_vm10, %v499_v59, %v216_v8  ;;  %vm233_vm12 = vweird.f32 %v501_v11 }
  0xda   :  { %v225_v33 = vsel %vm222_vm11, %v224_v12, %v220_v14  ;;  %vm234_vm14 = vmor %vm232_vm13, %vm233_vm12 }
  0xdb   :  { %v229_v16 = vsub.f32 1.0, %v228_v13  ;;  %v248_v17 = vmul.f32 %v244_v9, %v225_v33 }
  0xdd   :  { %v698_v20 = vadd.f32 %v248_v17, %v670_v34  ;;  %v230_v21 = vmul.f32 %v501_v11, %v229_v16 }
  0xdf   :  { %v231_v23 = vadd.f32 %v501_v11, %v230_v21  ;;  %316 = vmatmul.f32.gmra.mxu2 %v698_v20  ;;  %345 = vmatmul.f32.gmra.mxu3 %v698_v20 }
  0xe1   :  { %v235_v25 = vsel %vm234_vm14, %v501_v11, %v231_v23 }
  0xe2   :  { %v240_v26 = vsel %vm237_vm15, %v239_v24, %v235_v25 }
  0xe3   :  { %v249_v27 = vmul.f32 %v245_v15, %v240_v26 }
  0xe5   :  { %v704_v34 = vadd.f32 %v249_v27, %v674_v35 }
  0xe7   :  { %319 = vmatmul.f32.gmra.mxu2 %v704_v34  ;;  %348 = vmatmul.f32.gmra.mxu3 %v704_v34 }
 0x152   :  { %v340_v31 = vpop.f32.mrf.mxu3  ;;  %v311_v40 = vpop.f32.mrf.mxu2 }
 0x153   :  { %v341_v32 = vadd.f32 %v340_v31, %v291_v29  ;;  %v312_v51 = vadd.f32 %v311_v40, %v708_v44 }
 0x155   :  { %v472_v36 = vmul.f32 -1.442695, %v341_v32  ;;  %v352_v57 = vmax.f32 %v312_v51, 0.0 }
 0x157   :  { %502 = vpow2.f32 %v472_v36  ;;  %v432_v3 = vsub.f32 %v352_v57, %v684_v52 }
 0x15a   :  { %v343_v37 = vpop.f32.mrf.mxu3  ;;  %v314_v50 = vpop.f32.mrf.mxu2 }
 0x15b   :  { %v344_v38 = vadd.f32 %v343_v37, %v291_v29  ;;  %v315_v2 = vadd.f32 %v314_v50, %v708_v44 }
 0x15d   :  { %v503_v39 = vpop.eup %502  ;;  %v473_v41 = vmul.f32 -1.442695, %v344_v38  ;;  %v353_v12 = vmax.f32 %v315_v2, 0.0 }
 0x15e   :  { %v368_v42 = vadd.f32 1.0, %v503_v39 }
 0x15f   :  { %504 = vpow2.f32 %v473_v41  ;;  %v433_v15 = vsub.f32 %v353_v12, %v691_v5 }
 0x160   :  { %506 = vrcp.f32 %v368_v42  ;;  %v383_v58 = vand.u32 2147483648, %v368_v42  ;;  %v381_v61 = vand.u32 2147483647, %v368_v42  ;;  %vm377_vm1 = vweird.f32 %v368_v42 }
 0x162   :  { %v346_v35 = vpop.f32.mrf.mxu3  ;;  %v384_v1 = vor.u32 1.1754944e-38, %v383_v58  ;;  %vm382_vm3 = vcmp.eq.f32.partialorder %v381_v61, 8.507059e+37  ;;  %v317_v6 = vpop.f32.mrf.mxu2 }
 0x163   :  { %v347_v43 = vadd.f32 %v346_v35, %v291_v29  ;;  %v318_v21 = vadd.f32 %v317_v6, %v708_v44 }
 0x165   :  { %v505_v45 = vpop.eup %504  ;;  %v474_v46 = vmul.f32 -1.442695, %v347_v43  ;;  %v354_v28 = vmax.f32 %v318_v21, 0.0 }
 0x166   :  { %v507_v47 = vpop.eup %506  ;;  %v369_v48 = vadd.f32 1.0, %v505_v45 }
 0x167   :  { %v373_v49 = vmul.f32 %v507_v47, %v368_v42  ;;  %508 = vpow2.f32 %v474_v46  ;;  %vm378_vm0 = vweird.f32 %v507_v47  ;;  %v434_v40 = vsub.f32 %v354_v28, %v698_v20 }
 0x168   :  { %510 = vrcp.f32 %v369_v48  ;;  %vm379_vm2 = vmor %vm377_vm1, %vm378_vm0  ;;  %v398_v10 = vand.u32 2147483648, %v369_v48  ;;  %v396_v13 = vand.u32 2147483647, %v369_v48  ;;  %vm392_vm5 = vweird.f32 %v369_v48 }
 0x169   :  { %v374_v53 = vsub.f32 1.0, %v373_v49 }
 0x16a   :  { %v349_v54 = vpop.f32.mrf.mxu3  ;;  %v399_v19 = vor.u32 1.1754944e-38, %v398_v10  ;;  %vm397_vm7 = vcmp.eq.f32.partialorder %v396_v13, 8.507059e+37  ;;  %v320_v31 = vpop.f32.mrf.mxu2 }
 0x16b   :  { %v375_v55 = vmul.f32 %v507_v47, %v374_v53  ;;  %v350_v56 = vadd.f32 %v349_v54, %v291_v29  ;;  %v321_v39 = vadd.f32 %v320_v31, %v708_v44 }
 0x16d   :  { %v509_v59 = vpop.eup %508  ;;  %v376_v60 = vadd.f32 %v507_v47, %v375_v55  ;;  %v475_v30 = vmul.f32 -1.442695, %v350_v56  ;;  %v355_v46 = vmax.f32 %v321_v39, 0.0 }
 0x16e   :  { %v511_v62 = vpop.eup %510  ;;  %v370_v63 = vadd.f32 1.0, %v509_v59 }
 0x16f   :  { %v388_v0 = vmul.f32 %v511_v62, %v369_v48  ;;  %512 = vpow2.f32 %v475_v30  ;;  %v380_v7 = vsel %vm379_vm2, %v507_v47, %v376_v60  ;;  %vm393_vm4 = vweird.f32 %v511_v62 }
 0x170   :  { %514 = vrcp.f32 %v370_v63  ;;  %v385_v8 = vsel %vm382_vm3, %v384_v1, %v380_v7  ;;  %vm394_vm6 = vmor %vm392_vm5, %vm393_vm4  ;;  %v413_v26 = vand.u32 2147483648, %v370_v63  ;;  %vm407_vm9 = vweird.f32 %v370_v63 }
 0x171   :  { %v389_v4 = vsub.f32 1.0, %v388_v0  ;;  %v436_v11 = vmul.f32 %v432_v3, %v385_v8  ;;  %v435_v51 = vsub.f32 %v355_v46, %v704_v34 }
 0x172   :  { %v414_v38 = vor.u32 1.1754944e-38, %v413_v26 }
 0x173   :  { %v390_v9 = vmul.f32 %v511_v62, %v389_v4  ;;  %v440_v16 = vadd.f32 %v436_v11, %v684_v52  ;;  %v411_v52 = vand.u32 2147483647, %v370_v63 }
 0x175   :  { %v513_v14 = vpop.eup %512  ;;  %v391_v33 = vadd.f32 %v511_v62, %v390_v9  ;;  %444 = vst [vmem:[#allocation8] sm:$0xff] %v440_v16  ;;  %vm412_vm11 = vcmp.eq.f32.partialorder %v411_v52, 8.507059e+37 }
 0x176   :  { %v515_v17 = vpop.eup %514  ;;  %v371_v18 = vadd.f32 1.0, %v513_v14 }
 0x177   :  { %v403_v22 = vmul.f32 %v515_v17, %v370_v63  ;;  %v395_v23 = vsel %vm394_vm6, %v511_v62, %v391_v33  ;;  %vm408_vm8 = vweird.f32 %v515_v17 }
 0x178   :  { %516 = vrcp.f32 %v371_v18  ;;  %v400_v25 = vsel %vm397_vm7, %v399_v19, %v395_v23  ;;  %vm409_vm10 = vmor %vm407_vm9, %vm408_vm8  ;;  %v428_v47 = vand.u32 2147483648, %v371_v18  ;;  %vm422_vm13 = vweird.f32 %v371_v18 }
 0x179   :  { %v404_v24 = vsub.f32 1.0, %v403_v22  ;;  %v437_v27 = vmul.f32 %v433_v15, %v400_v25 }
 0x17a   :  { %v429_v44 = vor.u32 1.1754944e-38, %v428_v47 }
 0x17b   :  { %v405_v29 = vmul.f32 %v515_v17, %v404_v24  ;;  %v441_v32 = vadd.f32 %v437_v27, %v691_v5  ;;  %v426_v5 = vand.u32 2147483647, %v371_v18 }
 0x17d   :  { %v406_v36 = vadd.f32 %v515_v17, %v405_v29  ;;  %445 = vst [vmem:[#allocation8 + $0x8] sm:$0xff] %v441_v32  ;;  %vm427_vm15 = vcmp.eq.f32.partialorder %v426_v5, 8.507059e+37 }
 0x17e   :  { %v517_v37 = vpop.eup %516 }
 0x17f   :  { %v418_v41 = vmul.f32 %v517_v37, %v371_v18  ;;  %v410_v42 = vsel %vm409_vm10, %v515_v17, %v406_v36  ;;  %vm423_vm12 = vweird.f32 %v517_v37 }
 0x180   :  { %v415_v35 = vsel %vm412_vm11, %v414_v38, %v410_v42  ;;  %vm424_vm14 = vmor %vm422_vm13, %vm423_vm12 }
 0x181   :  { %v419_v43 = vsub.f32 1.0, %v418_v41  ;;  %v438_v45 = vmul.f32 %v434_v40, %v415_v35 }
 0x183   :  { %v420_v48 = vmul.f32 %v517_v37, %v419_v43  ;;  %v442_v49 = vadd.f32 %v438_v45, %v698_v20 }
 0x185   :  { %v421_v50 = vadd.f32 %v517_v37, %v420_v48  ;;  %446 = vst [vmem:[#allocation8 + $0x10] sm:$0xff] %v442_v49 }
 0x187   :  { %v425_v53 = vsel %vm424_vm14, %v517_v37, %v421_v50 }
 0x188   :  { %v430_v54 = vsel %vm427_vm15, %v429_v44, %v425_v53 }
 0x189   :  { %v439_v55 = vmul.f32 %v435_v51, %v430_v54 }
 0x18b   :  { %v443_v56 = vadd.f32 %v439_v55, %v704_v34 }
 0x18d   :  { %447 = vst [vmem:[#allocation8 + $0x18] sm:$0xff] %v443_v56 }
 0x18e   :  { %460 = dma.vmem_to_hbm [thread:$0]  %s453_s4, 512, %s455_s7, [#allocation4], %s624_s24, %s624_s24, %s625_s25  }
 0x18f   :  { %618 = dma.done.wait [#allocation4], 512  }
 0x190   :  { %619 = vsyncadd [#allocation4], 4294966784 }
 0x191   :  { %465 = vsyncpa [#allocation3], 1 }
 0x192   :  { %466 = vsyncpa [#allocation6], 1 }
 0x193   :  { %467 = vsyncpa [#allocation4], 1 }

</bundles_post_ra>
